<compile_context>
chip_gen: v6e
topology: v6e:2x2x1
jax: 0.10.0
libtpu: 0.0.40
codegen_flags: <defaults>
</compile_context>

<pallas_src>
import functools

import jax
import jax.numpy as jnp
from jax.experimental import pallas as pl
from jax.experimental.pallas import tpu as pltpu


def _layernorm_kernel(x_ref, gamma_ref, beta_ref, o_ref, *, eps, dim):
    # x_ref: (TR, D) tile of rows; gamma/beta: (1, D), already f32.
    x = x_ref[...].astype(jnp.float32)

    # Single pass over x: sum and sum-of-squares (two back-to-back XLU
    # cross-lane reductions, no centered-then-reduce serialization).
    s1 = jnp.sum(x, axis=-1, keepdims=True)        # (TR, 1)
    s2 = jnp.sum(x * x, axis=-1, keepdims=True)    # (TR, 1)

    mean = s1 * (1.0 / dim)
    # torch.std_mean default: unbiased variance (ddof = 1).
    var = (s2 - s1 * mean) * (1.0 / (dim - 1))
    var = jnp.maximum(var, 0.0)                    # guard tiny negative round-off
    std = jnp.sqrt(var)

    # One per-row reciprocal (exact), then only per-element multiplies/adds.
    inv = 1.0 / (std + eps)                        # (TR, 1)

    out = (x - mean) * inv * gamma_ref[...] + beta_ref[...]
    o_ref[...] = out.astype(o_ref.dtype)


def _round_up(x, m):
    return ((x + m - 1) // m) * m


def _choose_tiling(rows, d, itemsize):
    """Pick (tile_rows, grid, padded_rows) for a flattened (rows, d) array."""
    # Sublane packing for the I/O dtype: 8 for f32, 16 for bf16, 32 for int8/fp8.
    sublane = max(8, 32 // max(itemsize, 1))

    # Target ~4 MiB per input tile buffer.  Double-buffered in + out tiles then
    # use ~16 MiB of VMEM -- large enough to amortize the ~0.35 us per-grid-step
    # overhead, small enough for v7x's 64 MiB per-core VMEM.
    target_tile_bytes = 4 * 1024 * 1024
    max_tr = max(sublane,
                 ((target_tile_bytes // max(d * itemsize, 1)) // sublane) * sublane)

    grid = pl.cdiv(rows, max_tr)
    # Keep at least 2 grid steps when there is enough work: v7x has 2 TensorCores
    # sharing the single "parallel" axis, and the pipeline needs overlap.
    if grid < 2 and rows >= 2 * sublane:
        grid = 2

    if grid <= 1:
        # Tiny input: one block equal to the full extent (no divisibility
        # constraint, no padding).
        return rows, 1, rows

    tile_rows = _round_up(pl.cdiv(rows, grid), sublane)
    grid = pl.cdiv(rows, tile_rows)
    return tile_rows, grid, tile_rows * grid


@functools.partial(jax.jit, static_argnames=("eps",))
def layer_norm(x, gamma, beta, eps=1e-10):
    orig_shape = x.shape
    d = orig_shape[-1]
    if d < 2:
        raise ValueError("unbiased std (ddof=1) requires at least 2 features")

    rows = 1
    for s in orig_shape[:-1]:
        rows *= int(s)
    x2 = x.reshape(rows, d)

    # Hoist parameter casts out of the kernel (done once, not per element chain).
    gamma2 = gamma.astype(jnp.float32).reshape(1, d)
    beta2 = beta.astype(jnp.float32).reshape(1, d)

    itemsize = x.dtype.itemsize
    tile_rows, grid, padded_rows = _choose_tiling(rows, d, itemsize)

    # TODO(synk): for feature dims < 128, pack 128//D logical rows per 128-lane
    # row (with a segment-matrix MXU reduction) so stores stay full-width vst;
    # the general path below keeps D directly on the lane axis.

    if padded_rows != rows:
        # Zero padding is numerically safe here (padded rows produce finite
        # values) and is sliced off below.
        x2 = jnp.pad(x2, ((0, padded_rows - rows), (0, 0)))

    # Explicit scoped-VMEM budget: 2 (double-buffer) x 2 (in + out) tiles plus
    # params and headroom.  Defaults (16/32 MiB) would reject the larger tiles.
    tile_bytes = tile_rows * d * itemsize
    vmem_limit = max(32 * 1024 * 1024, 4 * tile_bytes + 4 * 1024 * 1024)

    kernel = functools.partial(_layernorm_kernel, eps=float(eps), dim=d)

    out2 = pl.pallas_call(
        kernel,
        out_shape=jax.ShapeDtypeStruct((padded_rows, d), x.dtype),
        grid=(grid,),
        in_specs=[
            pl.BlockSpec((tile_rows, d), lambda i: (i, 0)),   # x row tile
            pl.BlockSpec((1, d), lambda i: (0, 0)),           # gamma (f32)
            pl.BlockSpec((1, d), lambda i: (0, 0)),           # beta  (f32)
        ],
        out_specs=pl.BlockSpec((tile_rows, d), lambda i: (i, 0)),
        compiler_params=pltpu.CompilerParams(
            dimension_semantics=("parallel",),
            vmem_limit_bytes=vmem_limit,
        ),
    )(x2, gamma2, beta2)

    if padded_rows != rows:
        out2 = out2[:rows]
    return out2.reshape(orig_shape)


if __name__ == "__main__":
    key = jax.random.PRNGKey(0)

    # Small shapes consistent with the module (lane-dense hidden size).
    batch, seq, dim = 2, 8, 128
    eps = 1e-10

    # Deterministic parameter init matching LayerNorm.__init__:
    #   beta = zeros(dim), gamma = ones(dim), eps = tensor([1e-10])
    gamma = jnp.ones((dim,), dtype=jnp.float32)
    beta = jnp.zeros((dim,), dtype=jnp.float32)

    x = jax.random.normal(key, (batch, seq, dim), dtype=jnp.float32)

    out = layer_norm(x, gamma, beta, eps=eps)
    out = jax.block_until_ready(out)

    # Reference in plain JAX (unbiased std, matching torch.std_mean).
    mean = jnp.mean(x, axis=-1, keepdims=True)
    std = jnp.sqrt(jnp.sum((x - mean) ** 2, axis=-1, keepdims=True) / (dim - 1))
    ref = (x - mean) / (std + eps) * gamma + beta
    assert jnp.allclose(out, ref, atol=1e-5, rtol=1e-5), "mismatch vs reference"

    print("KERNEL_OK")
</pallas_src>

<mosaic_0001>
module attributes {stable_mosaic.version = 11 : i64} {
  func.func @_layernorm_kernel(%arg0: i32, %arg1: memref<8x128xf32, #tpu.memory_space<vmem>>, %arg2: memref<1x128xf32, #tpu.memory_space<vmem>>, %arg3: memref<1x128xf32, #tpu.memory_space<vmem>>, %arg4: memref<8x128xf32, #tpu.memory_space<vmem>>) attributes {dimension_semantics = [#tpu.dimension_semantics<parallel>], iteration_bounds = array<i64: 2>, scalar_prefetch = 0 : i64, scratch_operands = 0 : i64, tpu.core_type = #tpu.core_type<tc>, window_params = [{transform_indices = @transform_0, window_bounds = array<i64: 8, 128>}, {pipeline_mode = #tpu.pipeline_mode<synchronous>, transform_indices = @transform_1, window_bounds = array<i64: 1, 128>}, {pipeline_mode = #tpu.pipeline_mode<synchronous>, transform_indices = @transform_2, window_bounds = array<i64: 1, 128>}, {transform_indices = @transform_3, window_bounds = array<i64: 8, 128>}]} {
    %c0 = arith.constant 0 : index
    %c0_0 = arith.constant 0 : index
    %0 = vector.load %arg1[%c0, %c0_0] : memref<8x128xf32, #tpu.memory_space<vmem>>, vector<8x128xf32>
    %cst = arith.constant dense<0.000000e+00> : vector<8xf32>
    %1 = vector.multi_reduction <add>, %0, %cst [1] : vector<8x128xf32> to vector<8xf32>
    %2 = vector.shape_cast %1 : vector<8xf32> to vector<8x1xf32>
    %3 = arith.mulf %0, %0 : vector<8x128xf32>
    %cst_1 = arith.constant dense<0.000000e+00> : vector<8xf32>
    %4 = vector.multi_reduction <add>, %3, %cst_1 [1] : vector<8x128xf32> to vector<8xf32>
    %5 = vector.shape_cast %4 : vector<8xf32> to vector<8x1xf32>
    %cst_2 = arith.constant 7.812500e-03 : f32
    %6 = vector.broadcast %cst_2 : f32 to vector<8x1xf32>
    %7 = arith.mulf %2, %6 : vector<8x1xf32>
    %8 = arith.mulf %2, %7 : vector<8x1xf32>
    %9 = arith.subf %5, %8 : vector<8x1xf32>
    %cst_3 = arith.constant 0.00787401571 : f32
    %10 = vector.broadcast %cst_3 : f32 to vector<8x1xf32>
    %11 = arith.mulf %9, %10 : vector<8x1xf32>
    %cst_4 = arith.constant 0.000000e+00 : f32
    %12 = vector.broadcast %cst_4 : f32 to vector<8x1xf32>
    %13 = arith.maximumf %11, %12 : vector<8x1xf32>
    %14 = math.sqrt %13 : vector<8x1xf32>
    %cst_5 = arith.constant 1.000000e-10 : f32
    %15 = vector.broadcast %cst_5 : f32 to vector<8x1xf32>
    %16 = arith.addf %14, %15 : vector<8x1xf32>
    %cst_6 = arith.constant 1.000000e+00 : f32
    %17 = vector.broadcast %cst_6 : f32 to vector<8x1xf32>
    %18 = arith.divf %17, %16 : vector<8x1xf32>
    %19 = vector.broadcast %7 : vector<8x1xf32> to vector<8x128xf32>
    %20 = arith.subf %0, %19 : vector<8x128xf32>
    %21 = vector.broadcast %18 : vector<8x1xf32> to vector<8x128xf32>
    %22 = arith.mulf %20, %21 : vector<8x128xf32>
    %c0_7 = arith.constant 0 : index
    %c0_8 = arith.constant 0 : index
    %23 = vector.load %arg2[%c0_7, %c0_8] : memref<1x128xf32, #tpu.memory_space<vmem>>, vector<1x128xf32>
    %24 = vector.broadcast %23 : vector<1x128xf32> to vector<8x128xf32>
    %25 = arith.mulf %22, %24 : vector<8x128xf32>
    %c0_9 = arith.constant 0 : index
    %c0_10 = arith.constant 0 : index
    %26 = vector.load %arg3[%c0_9, %c0_10] : memref<1x128xf32, #tpu.memory_space<vmem>>, vector<1x128xf32>
    %27 = vector.broadcast %26 : vector<1x128xf32> to vector<8x128xf32>
    %28 = arith.addf %25, %27 : vector<8x128xf32>
    %c0_11 = arith.constant 0 : index
    %c0_12 = arith.constant 0 : index
    %29 = vector.load %arg4[%c0_11, %c0_12] : memref<8x128xf32, #tpu.memory_space<vmem>>, vector<8x128xf32>
    tpu.vector_store %arg4[%c0_11, %c0_12], %28 {strides = array<i32>} : memref<8x128xf32, #tpu.memory_space<vmem>>, vector<8x128xf32>,
    return
  }
  func.func @transform_0(%arg0: i32) -> (i32, i32) {
    %c0_i32 = arith.constant 0 : i32
    %c0_i32_0 = arith.constant 0 : i32
    return %arg0, %c0_i32 : i32, i32
  }
  func.func @transform_1(%arg0: i32) -> (i32, i32) {
    %c0_i32 = arith.constant 0 : i32
    %c0_i32_0 = arith.constant 0 : i32
    %c0_i32_1 = arith.constant 0 : i32
    return %c0_i32, %c0_i32_0 : i32, i32
  }
  func.func @transform_2(%arg0: i32) -> (i32, i32) {
    %c0_i32 = arith.constant 0 : i32
    %c0_i32_0 = arith.constant 0 : i32
    %c0_i32_1 = arith.constant 0 : i32
    return %c0_i32, %c0_i32_0 : i32, i32
  }
  func.func @transform_3(%arg0: i32) -> (i32, i32) {
    %c0_i32 = arith.constant 0 : i32
    %c0_i32_0 = arith.constant 0 : i32
    return %arg0, %c0_i32 : i32, i32
  }
}

</mosaic_0001>

<bundles_post_ra>
// kernel: layer_norm.1
= control target key start
LH: loop header
LB: loop body
LE: loop exit
PB: predicated region body
PF: predicated region fallthrough
CT: control target
= control target key end

     0   :  { %8 = vsyncpa [#allocation3], 0  ;;  %s641_s0 = inlined_call_operand.hbm [shape: f32[16,128], index: 0, kind: input, shape index: {}]   ;;  %s642_s1 = inlined_call_operand.vmem [shape: f32[1,128], index: 1, kind: input, shape index: {}]   ;;  %s643_s2 = inlined_call_operand.vmem [shape: f32[1,128], index: 2, kind: input, shape index: {}]   ;;  %s644_s3 = inlined_call_operand.hbm [shape: f32[16,128], index: 3, kind: output, shape index: {}]  }
   0x1   :  { %10 = vsyncpa [#allocation3 + $0x1], 0 }
   0x2   :  { %11 = vsyncpa [#allocation4], 0 }
   0x3   :  { %13 = vsyncpa [#allocation4 + $0x1], 0  ;;  %s490_s12 = smov 0   ;;  %s492_s13 = smov 0  }
   0x4   :  { %s494_s14 = smov 0   ;;  %s496_s15 = smov 0  }
   0x5 LB: > { %s511_s16 = sadd.s32 4294967295, %s466_s15   ;;  %s310_s17 = sadd.s32 4294967294, %s466_s15   ;;  %s466_s15 = sphi %s496_s15, %s661_s15   ;;  %s462_s14 = sphi %s494_s14, %s660_s14   ;;  %s458_s13 = sphi %s492_s13, %s659_s13   ;;  %s454_s12 = sphi %s490_s12, %s658_s12  }
   0x6   : > { %s515_s18 = sadd.s32 1, %s466_s15   ;;  %s26_s19 = sadd.s32 1, %s462_s14 }
   0x7   : > { %s23_s20 = ssub.s32 %s466_s15, %s515_s18  ;;  %p33_p0 = scmp.ne.s32.totalorder %s462_s14, %s458_s13 }
   0x8   : > { %p24_p1 = scmp.eq.s32.totalorder %s23_s20, 0  ;;  %p34_p2 = scmp.eq.s32.totalorder %s466_s15, 0 }
   0x9   : > { %p39_p3 = scmp.ne.s32.totalorder %s458_s13, %s454_s12  ;;  %p40_p4 = scmp.eq.s32.totalorder %s511_s16, 0 }
   0xa   : > { %s527_s21 = scalar_select %p24_p1, %s462_s14, %s26_s19  }
   0xb   : > { %p529_p5 = por %p34_p2, %p33_p0  ;;  %p533_p6 = por %p40_p4, %p39_p3 }
   0xc   : > { %p105_p7 = scmp.eq.s32.totalorder %s511_s16, 1  ;;  %p111_p8 = scmp.eq.s32.totalorder %s310_s17, 1 }
   0xd   : > { %s648_s23 = scalar_select %p533_p6, 1, 0 }
   0xe   : > { %p336_p10 = scmp.lt.s32.totalorder %s466_s15, 2  ;;  %p540_p11 = por %p105_p7, %p33_p0 }
   0xf   : > { %p544_p12 = por %p111_p8, %p39_p3  ;;  %s137_s26 = sand.u32 1, %s462_s14  }
  0x10   : > { %s649_s24 = scalar_select %p540_p11, 1, 0 }
  0x11   : > { %s650_s25 = scalar_select %p544_p12, 1, 0 }
  0x12   : > { %s314_s27 = sshll.u32 %s466_s15, 7  ;;  %s313_s28 = sshll.u32 %s137_s26, 3 }
  0x13   : > { %s553_s4 = scalar_lea.hbm %s641_s0, %s314_s27  ;;  %s141_s5 = scalar_lea.vmem [#allocation2], %s313_s28 }
  0x14   : > { %s148_s6 = sshll.u32 %s141_s5, 4  ;;  %p557_p13 = pnand %p336_p10, %p529_p5  ;;  %s561_s6 = int_to_ptr.vmem [resolvable:$true] %s148_s6 }
  0x15   : > { %s138_s8 = scalar_lea.sflag [#allocation3], %s137_s26  ;;  %s374_s9 = scalar_lea.hbm %s553_s4, 128 }
  0x16   : > { %p375_p2 = scmp.ne.s32.totalorder %s553_s4, %s374_s9  ;;  %p376_p3 = pneg %p557_p13 }
  0x17   : > { %s379_s17 = scalar_lea.hbm %s641_s0, 256  ;;  %p380_p5 = scmp.lt.s32.totalorder %s553_s4, %s641_s0 }
  0x18   : > { %p377_p4 = pnand %p376_p3, %p375_p2  ;;  %p381_p8 = scmp.lt.s32.totalorder %s379_s17, %s374_s9 }
  0x1a   : > { %p378_p7 = pneg %p377_p4  ;;  %p382_p10 = por %p381_p8, %p380_p5 }
  0x1c   : > { %p383_p9 = pnand %p382_p10, %p378_p7 }
  0x1e   : > { %386 = shalt.err (!%p383_p9)
}
  0x1f   : > { %s387_s22 = scalar_lea.vmem %s561_s6, 128  ;;  %s468_s26 = smov [#allocation2]  }
  0x20   : > { %p388_p0 = scmp.ne.s32.totalorder %s561_s6, %s387_s22  ;;  %s392_s27 = sshll.u32 %s468_s26, 4  ;;  %s393_s27 = int_to_ptr.vmem [resolvable:$false] %s392_s27 }
  0x21   : > { %s394_s28 = scalar_lea.vmem %s393_s27, 256  ;;  %p395_p4 = scmp.lt.s32.totalorder %s561_s6, %s393_s27 }
  0x22   : > { %p390_p1 = pnand %p388_p0, %p376_p3  ;;  %p396_p12 = scmp.lt.s32.totalorder %s394_s28, %s387_s22 }
  0x24   : > { %p391_p2 = pneg %p390_p1  ;;  %p397_p11 = por %p396_p12, %p395_p4 }
  0x26   : > { %p398_p6 = pnand %p397_p11, %p391_p2 }
  0x28   : > { %401 = shalt.err (!%p398_p6)
}
  0x29   : > { %331 = dma.hbm_to_vmem [thread:$0]  (!%p557_p13), %s553_s4, 128, %s561_s6, %s138_s8  }
  0x2a   : > { %p652_p9 = scmp.lt.s32.totalorder %s466_s15, 3  ;;  %p653_p7 = scmp.ge.s32.totalorder %s466_s15, 1 }
  0x2c   : > { %p154_p0 = pnand %p653_p7, %p652_p9 }
  0x2d   : > { %s588_s29 = sand.u32 (!%p154_p0), 1, %s458_s13   ;;  %p654_p6 = scmp.ne.s32.totalorder (!%p154_p0), %s648_s23, 0 }
  0x2e   : > { %157 = sbr.rel (%p154_p0) target bundleno = 254 (0xfe), region = 32  ;;  %s316_s30 = sshll.u32 (!%p154_p0), %s588_s29, 3 }
  0x2f   : > { %s160_s5 = scalar_lea.sflag (!%p154_p0), [#allocation3], %s588_s29  ;;  %s163_s7 = scalar_lea.vmem (!%p154_p0), [#allocation2], %s316_s30 }
  0x33   : > { %445 = dma.done.wait (%p654_p6), %s160_s5, 128  }
  0x34   : > { %447 = vsyncadd (%p654_p6), %s160_s5, 4294967168  ;;  %v186_v0 = vld [vmem:[%s163_s7] sm:$0xff]  ;;  %s321_s9 = sshll.u32 %s511_s16, 7  ;;  %s185_s10 = scalar_lea.vmem [#allocation5], %s316_s30 }
  0x35   : > { %187 = vadd.xlane.f32.xlu0 %v186_v0  ;;  %v189_v1 = vmul.f32 %v186_v0, %v186_v0  ;;  %v318_v17 = vld [vmem:[%s642_s1] ss:$0 sm:$0xff]  ;;  %s240_s11 = sshll.u32 %s185_s10, 4  ;;  %s238_s20 = scalar_lea.hbm %s644_s3, %s321_s9  ;;  %s241_s11 = int_to_ptr.vmem [resolvable:$true] %s240_s11 }
  0x36   : > { %v319_v19 = vld [vmem:[%s643_s2] ss:$0 sm:$0xff]  ;;  %s227_s22 = scalar_lea.sflag [#allocation4], %s588_s29  ;;  %s402_s26 = scalar_lea.vmem %s241_s11, 128 }
  0x37   : > { %p403_p11 = scmp.ne.s32.totalorder %s241_s11, %s402_s26  ;;  %p655_p12 = scmp.ne.s32.totalorder %s649_s24, 0 }
  0x38   : > { %s469_s27 = smov [#allocation5]  }
  0x39   : > { %190 = vadd.xlane.f32.xlu0 %v189_v1  ;;  %p404_p13 = pnand %p403_p11, %p655_p12  ;;  %s406_s28 = sshll.u32 %s469_s27, 4  ;;  %s407_s28 = int_to_ptr.vmem [resolvable:$false] %s406_s28 }
  0x3a   : > { %s408_s16 = scalar_lea.vmem %s407_s28, 256  ;;  %p409_p3 = scmp.lt.s32.totalorder %s241_s11, %s407_s28 }
  0x3b   : > { %p405_p1 = pneg %p404_p13  ;;  %p410_p5 = scmp.lt.s32.totalorder %s408_s16, %s402_s26 }
  0x3d   : > { %p411_p8 = por %p410_p5, %p409_p3 }
  0x3f   : > { %p412_p10 = pnand %p411_p8, %p405_p1 }
  0xbe   : > { %v188_v2 = vpop.xlane.xlu0 %187 }
  0xbf   : > { %v192_v3 = vmul.f32 0.0078125, %v188_v2 }
  0xc1   : > { %v193_v4 = vmul.f32 %v192_v3, %v188_v2  ;;  %v207_v15 = vsub.f32 %v186_v0, %v192_v3 }
  0xc2   : > { %v191_v5 = vpop.xlane.xlu0 %190 }
  0xc3   : > { %v194_v6 = vsub.f32 %v191_v5, %v193_v4 }
  0xc5   : > { %v195_v7 = vmul.f32 0.007874016, %v194_v6 }
  0xc7   : > { %v196_v8 = vmax.f32 %v195_v7, 0.0 }
  0xc9   : > { %370 = vrsqrt.f32 %v196_v8  ;;  %vm199_vm0 = vcmp.eq.f32.partialorder %v196_v8, inf  ;;  %v202_v11 = vand.u32 2147483648, %v196_v8  ;;  %vm201_vm1 = vcmp.eq.f32.partialorder %v196_v8, 0.0 }
  0xd6   : > { %v371_v9 = vpop.eup %370 }
  0xd7   : > { %v198_v10 = vmul.f32 %v371_v9, %v196_v8 }
  0xd9   : > { %v200_v12 = vsel %vm199_vm0, %v196_v8, %v198_v10 }
  0xda   : > { %v203_v13 = vsel %vm201_vm1, %v202_v11, %v200_v12 }
  0xdb   : > { %v204_v14 = vadd.f32 1e-10, %v203_v13 }
  0xdd   : > { %372 = vrcp.f32 %v204_v14 }
  0xea   : > { %v373_v16 = vpop.eup %372 }
  0xeb   : > { %v208_v18 = vmul.f32 %v373_v16, %v207_v15 }
  0xed   : > { %v216_v20 = vmul.f32 %v318_v17, %v208_v18 }
  0xef   : > { %v224_v21 = vadd.f32 %v319_v19, %v216_v20 }
  0xf1   : > { %225 = vst [vmem:[%s185_s10] sm:$0xff] %v224_v21 }
  0xf2   : > { %415 = shalt.err (!%p412_p10)
}
  0xf3   : > { %s416_s30 = scalar_lea.hbm %s238_s20, 128  ;;  %s420_s7 = scalar_lea.hbm %s644_s3, 256 }
  0xf4   : > { %p417_p2 = scmp.ne.s32.totalorder %s238_s20, %s416_s30  ;;  %p421_p7 = scmp.lt.s32.totalorder %s238_s20, %s644_s3 }
  0xf5   : > { %p422_p0 = scmp.lt.s32.totalorder %s420_s7, %s416_s30 }
  0xf6   : > { %p418_p4 = pnand %p417_p2, %p655_p12 }
  0xf7   : > { %p423_p6 = por %p422_p0, %p421_p7 }
  0xf8   : > { %p419_p9 = pneg %p418_p4 }
  0xfa   : > { %p424_p11 = pnand %p423_p6, %p419_p9 }
  0xfc   : > { %427 = shalt.err (!%p424_p11)
}
  0xfd   : > { %326 = dma.vmem_to_hbm [thread:$0]  (%p655_p12), %s241_s11, 128, %s238_s20, %s227_s22  }
  0xfe PF: > { %s252_s6 = sand.u32 1, %s454_s12   ;;  %p656_p13 = scmp.ne.s32.totalorder %s650_s25, 0 }
  0xff   : > { %p657_p1 = scmp.ge.s32.totalorder %s466_s15, 2  ;;  %s253_s8 = scalar_lea.sflag [#allocation4], %s252_s6 }
 0x101   : > { %p333_p3 = pnand %p657_p1, %p656_p13 }
 0x103   : > { %p334_p5 = pneg %p333_p3 }
 0x105   : > { %449 = dma.done.wait (%p334_p5), %s253_s8, 128  }
 0x106   : > { %451 = vsyncadd (%p334_p5), %s253_s8, 4294967168  ;;  %p16_p8 = scmp.ge.s32.totalorder %s515_s18, 4   ;;  %s658_s12 = smov %s458_s13 }
 0x107   : > { %s659_s13 = smov %s462_s14  ;;  %s660_s14 = smov %s527_s21 }
 0x108   : > { %s661_s15 = smov %s515_s18  ;;  %18 = sbr.rel (!%p16_p8) target bundleno = 5 (0x5), region = 77 }
 0x10d   :  { %258 = vsyncpa [#allocation3], 1 }
 0x10e   :  { %260 = vsyncpa [#allocation3 + $0x1], 1 }
 0x10f   :  { %261 = vsyncpa [#allocation4], 1 }
 0x110   :  { %263 = vsyncpa [#allocation4 + $0x1], 1 }

</bundles_post_ra>
